<compile_context>
chip_gen: v5e
topology: v5e:2x2
jax: 0.10.0
libtpu: 0.0.40
codegen_flags: <defaults>
</compile_context>

<pallas_src>
import functools

import jax
import jax.numpy as jnp
from jax.experimental import pallas as pl
from jax.experimental.pallas import tpu as pltpu


def _avg_pool_kernel(x_ref, o_ref, *, chunk_size, group):
    # x_ref: (TN, chunk_size, TD) -- TN pooled chunks x chunk_size tokens x TD features
    # o_ref: (TN, TD)
    inv_c = 1.0 / chunk_size
    if jnp.issubdtype(x_ref.dtype, jnp.floating) and jnp.dtype(x_ref.dtype).itemsize >= 4:
        # f32: reduce the chunk axis directly; accumulation is already full precision.
        s = jnp.sum(x_ref[...], axis=1)
    else:
        # bf16 / fp8 / int8 / int32: widen to f32 before summing (no integer overflow,
        # single rounding at the end).  Widen one packed sublane *group* at a time so the
        # unpack/cross-sublane work is amortized and the live f32 temporary stays at
        # group x output-tile size.  chunk_size/group are static -> loop fully unrolled.
        x = x_ref[...]
        s = None
        for j0 in range(0, chunk_size, group):
            j1 = min(j0 + group, chunk_size)
            gs = jnp.sum(x[:, j0:j1, :].astype(jnp.float32), axis=1)
            s = gs if s is None else s + gs
    o_ref[...] = (s * inv_c).astype(o_ref.dtype)


def _round_up(v, m):
    return -(-v // m) * m


def _largest_divisor(n, cap, multiple_of=1):
    """Largest divisor of n that is <= cap and a multiple of `multiple_of` (None if none)."""
    cap = min(n, cap)
    for t in range(cap, 0, -1):
        if n % t == 0 and t % multiple_of == 0:
            return t
    return None


def _running_on_two_core_tpu():
    """Best-effort detection of a 2-TensorCore chip (v7x)."""
    try:
        kind = jax.devices()[0].device_kind.lower()
    except Exception:  # pragma: no cover - defensive
        return False
    return "v7" in kind


def average_pool(x, chunk_size, *, block_chunks=None, block_features=None,
                 block_bytes=4 * 1024 * 1024, input_buffering=2, core_parallel=None):
    """Pallas equivalent of AveragePool(chunk_size)(x) for x of shape (b, seq, d).

    block_chunks tiles the flattened (batch * pooled-chunk) axis; block_features tiles d.
    """
    b, seq, d = x.shape
    if seq % chunk_size != 0:
        raise ValueError("sequence length must be a multiple of chunk_size")
    n = seq // chunk_size
    big_n = b * n                                   # flattened (batch, pooled-chunk) axis
    itemsize = jnp.dtype(x.dtype).itemsize
    # sublane packing: 8 rows for 32-bit, 16 for bf16, 32 for 8-bit dtypes
    pack = 8 * max(1, 4 // itemsize)
    c_pad = _round_up(chunk_size, pack)             # chunk axis as padded in VMEM

    # ---- feature (lane) tile: prefer full d (contiguous HBM runs, one fewer grid axis);
    #      only split when one chunk row at full d exceeds the per-block byte budget. ----
    if block_features is not None:
        td = block_features
        if td != d and d % td != 0:
            raise ValueError("block_features must divide d (or equal d)")
    else:
        if c_pad * _round_up(d, 128) * itemsize <= block_bytes:
            td = d
        else:
            cap_td = max(1, block_bytes // (c_pad * itemsize))
            td = _largest_divisor(d, cap_td, multiple_of=128)
            if td is None:
                # minimal legal tile even if slightly over budget
                td = 128 if d % 128 == 0 else d
    td_pad = _round_up(td, 128)

    # ---- pooled-chunk (sublane) tile: largest divisor of b*n whose input block fits the
    #      byte budget.  Prefer pack-aligned, then 8-aligned, then any divisor (a small
    #      unaligned tn only costs masked stores) -- this can never emit a block larger
    #      than ~block_bytes, fixing the old 'or n' VMEM-OOM fallback. ----
    if block_chunks is not None:
        tn = block_chunks
        if tn != big_n and big_n % tn != 0:
            raise ValueError("block_chunks must divide b * (seq // chunk_size)")
    else:
        cap_tn = max(1, block_bytes // (c_pad * td_pad * itemsize))
        tn = (_largest_divisor(big_n, cap_tn, multiple_of=pack)
              or _largest_divisor(big_n, cap_tn, multiple_of=8)
              or _largest_divisor(big_n, cap_tn)
              or 1)

    grid = (big_n // tn, d // td)

    # ---- dimension semantics: on v7x put CORE_PARALLEL on the largest evenly-splittable
    #      grid axis so both TensorCores stream from HBM; plain "parallel" elsewhere. ----
    if core_parallel is None:
        core_parallel = _running_on_two_core_tpu()
    sems = [pltpu.PARALLEL, pltpu.PARALLEL]
    if core_parallel:
        if grid[0] >= 2 and grid[0] % 2 == 0:
            sems[0] = pltpu.CORE_PARALLEL
        elif grid[1] >= 2 and grid[1] % 2 == 0:
            sems[1] = pltpu.CORE_PARALLEL
    sems = tuple(sems)

    # ---- explicit VMEM limit sized from the actual blocks (keeps pipelining intact on
    #      v5e's 16 MiB scoped default and stays well under v7x's 64 MiB physical). ----
    n_in_bufs = max(2, int(input_buffering) if input_buffering else 2)
    in_block_bytes = tn * c_pad * td_pad * itemsize
    out_block_bytes = _round_up(tn, pack) * td_pad * itemsize
    need = n_in_bufs * in_block_bytes + 2 * out_block_bytes
    vmem_limit = int(min(max(need + (4 << 20), 32 << 20), 128 << 20))

    # Free, contiguous HBM-side reshape: chunk split + batch fold never touch VMEM layout.
    x3 = x.reshape(big_n, chunk_size, d)

    in_spec_kwargs = {}
    if input_buffering is not None and input_buffering > 2:
        # Sweep knob for v7x: a third input buffer can hide DMA-issue latency (cheap at
        # ~4 MiB blocks).  Default stays at standard double-buffering.
        in_spec_kwargs["pipeline_mode"] = pl.Buffered(int(input_buffering))
    in_spec = pl.BlockSpec((tn, chunk_size, td), lambda i, j: (i, 0, j), **in_spec_kwargs)
    out_spec = pl.BlockSpec((tn, td), lambda i, j: (i, j))

    kernel = functools.partial(_avg_pool_kernel, chunk_size=chunk_size, group=pack)
    out = pl.pallas_call(
        kernel,
        out_shape=jax.ShapeDtypeStruct((big_n, d), x.dtype),
        grid_spec=pltpu.PrefetchScalarGridSpec(
            num_scalar_prefetch=0,
            grid=grid,
            in_specs=[in_spec],
            out_specs=out_spec,
        ),
        compiler_params=pltpu.CompilerParams(
            dimension_semantics=sems,
            vmem_limit_bytes=vmem_limit),
        cost_estimate=pl.CostEstimate(
            flops=b * seq * d + b * n * d,
            transcendentals=0,
            bytes_accessed=(b * seq * d + b * n * d) * itemsize),
    )(x3)
    return out.reshape(b, n, d)


def _reference(x, chunk_size):
    b, seq, d = x.shape
    n = seq // chunk_size
    return jnp.mean(x.astype(jnp.float32).reshape(b, n, chunk_size, d), axis=2)


if __name__ == "__main__":
    key = jax.random.PRNGKey(0)
    k1, k2, k3, k4 = jax.random.split(key, 4)

    # 1) small f32 case (auto tiles: td = d = 64 full extent, tn covers the whole flat axis)
    b, n, c, d = 2, 4, 8, 64
    x = jax.random.normal(k1, (b, n * c, d), dtype=jnp.float32)
    out = jax.block_until_ready(average_pool(x, c))
    assert out.shape == (b, n, d)
    assert jnp.allclose(out, _reference(x, c), atol=1e-5, rtol=1e-5)

    # 2) f32 with a chunk_size that is NOT sublane-aligned plus explicit tiles that
    #    exercise a real multi-step (4, 2) grid over the flattened axis.
    b, n, c, d = 2, 16, 4, 256
    x = jax.random.normal(k2, (b, n * c, d), dtype=jnp.float32)
    out = jax.block_until_ready(
        average_pool(x, c, block_chunks=8, block_features=128))
    assert out.shape == (b, n, d)
    assert jnp.allclose(out, _reference(x, c), atol=1e-5, rtol=1e-5)

    # 3) bf16 input: exercises the group-wise f32-widening path.
    b, n, c, d = 2, 16, 8, 256
    x = jax.random.normal(k3, (b, n * c, d), dtype=jnp.bfloat16)
    out = jax.block_until_ready(average_pool(x, c))
    assert out.shape == (b, n, d)
    assert out.dtype == jnp.bfloat16
    assert jnp.allclose(out.astype(jnp.float32), _reference(x, c), atol=1e-2, rtol=1e-2)

    # 4) prime flattened axis (b*n = 7): exercises the hardened tn fallback (full-extent
    #    divisor, no VMEM blowup, no 'or n' escape hatch needed).
    b, n, c, d = 1, 7, 8, 256
    x = jax.random.normal(k4, (b, n * c, d), dtype=jnp.float32)
    out = jax.block_until_ready(average_pool(x, c))
    assert out.shape == (b, n, d)
    assert jnp.allclose(out, _reference(x, c), atol=1e-5, rtol=1e-5)

    print("KERNEL_OK")
</pallas_src>

<mosaic_0001>
module attributes {stable_mosaic.version = 11 : i64} {
  func.func @_avg_pool_kernel(%arg0: i32, %arg1: i32, %arg2: memref<8x8x64xf32, #tpu.memory_space<vmem>>, %arg3: memref<8x64xf32, #tpu.memory_space<vmem>>) attributes {dimension_semantics = [#tpu.dimension_semantics<parallel>, #tpu.dimension_semantics<parallel>], iteration_bounds = array<i64: 1, 1>, scalar_prefetch = 0 : i64, scratch_operands = 0 : i64, tpu.core_type = #tpu.core_type<tc>, window_params = [{transform_indices = @transform_0, window_bounds = array<i64: 8, 8, 64>}, {transform_indices = @transform_1, window_bounds = array<i64: 8, 64>}]} {
    %c0 = arith.constant 0 : index
    %c0_0 = arith.constant 0 : index
    %c0_1 = arith.constant 0 : index
    %0 = vector.load %arg2[%c0, %c0_0, %c0_1] : memref<8x8x64xf32, #tpu.memory_space<vmem>>, vector<8x8x64xf32>
    %cst = arith.constant dense<0.000000e+00> : vector<8x64xf32>
    %1 = vector.multi_reduction <add>, %0, %cst [1] : vector<8x8x64xf32> to vector<8x64xf32>
    %cst_2 = arith.constant 1.250000e-01 : f32
    %2 = vector.broadcast %cst_2 : f32 to vector<8x64xf32>
    %3 = arith.mulf %1, %2 : vector<8x64xf32>
    %c0_3 = arith.constant 0 : index
    %c0_4 = arith.constant 0 : index
    %4 = vector.load %arg3[%c0_3, %c0_4] : memref<8x64xf32, #tpu.memory_space<vmem>>, vector<8x64xf32>
    tpu.vector_store %arg3[%c0_3, %c0_4], %3 {strides = array<i32>} : memref<8x64xf32, #tpu.memory_space<vmem>>, vector<8x64xf32>,
    return
  }
  func.func @transform_0(%arg0: i32, %arg1: i32) -> (i32, i32, i32) {
    %c0_i32 = arith.constant 0 : i32
    %c0_i32_0 = arith.constant 0 : i32
    return %arg0, %c0_i32, %arg1 : i32, i32, i32
  }
  func.func @transform_1(%arg0: i32, %arg1: i32) -> (i32, i32) {
    %c0_i32 = arith.constant 0 : i32
    return %arg0, %arg1 : i32, i32
  }
}

</mosaic_0001>

<bundles_post_ra>
// kernel: tpu_custom_call.1
= control target key start
LH: loop header
LB: loop body
LE: loop exit
PB: predicated region body
PF: predicated region fallthrough
CT: control target
= control target key end

     0   :  { %6 = vsyncpa [#allocation3], 0  ;;  %s227_s0 = inlined_call_operand.hbm [shape: f32[8,8,64], index: 0, kind: input, shape index: {}]   ;;  %s228_s1 = inlined_call_operand.hbm [shape: f32[8,64], index: 1, kind: output, shape index: {}]  }
   0x1   :  { %7 = vsyncpa [#allocation4], 0  ;;  %s12_s8 = sshll.u32 %s227_s0, 4  ;;  %s195_s9 = smov [#allocation2]   ;;  %s13_s8 = int_to_ptr.hbm [resolvable:$true] %s12_s8 }
   0x2   :  { %s14_s10 = sshll.u32 %s195_s9, 4  ;;  %s196_s11 = smov 128   ;;  %s15_s10 = int_to_ptr.vmem [resolvable:$true] %s14_s10 }
   0x3   :  { %s197_s12 = smov 8  }
   0x4   :  { %20 = dma.hbm_to_vmem [thread:$0]  %s13_s8, 1024, %s15_s10, [#allocation3], %s196_s11, %s196_s11, %s197_s12  }
   0x5   :  { %191 = dma.done.wait [#allocation3], 1024  }
   0x6   :  { %192 = vsyncadd [#allocation3], 4294966272  ;;  %vm33_vm0 = vcmask 523264   ;;  %v25_v0 = vld [vmem:[#allocation2] sm:$0xff]  ;;  %v26_v1 = vld [vmem:[#allocation2 + $0x8] sm:$0xff]  ;;  %vm106_vm1 = vcmask 1041409  }
   0x7   :  { %v27_v2 = vld [vmem:[#allocation2 + $0x10] sm:$0xff]  ;;  %v28_v3 = vld [vmem:[#allocation2 + $0x18] sm:$0xff]  ;;  %v29_v4 = vld [vmem:[#allocation2 + $0x20] sm:$0xff]  ;;  %v34_v6 = vsel %vm33_vm0, %v25_v0, 0.0  ;;  %v41_v7 = vsel %vm33_vm0, %v26_v1, 0.0  ;;  %vm108_vm2 = vcmask 1042434  }
   0x8   :  { %v30_v5 = vld [vmem:[#allocation2 + $0x28] sm:$0xff]  ;;  %v48_v8 = vsel %vm33_vm0, %v27_v2, 0.0  ;;  %v31_v9 = vld [vmem:[#allocation2 + $0x30] sm:$0xff]  ;;  %v32_v10 = vld [vmem:[#allocation2 + $0x38] sm:$0xff]  ;;  %v35_v11 = vrot.slane %v34_v6, 4  ;;  %v42_v12 = vrot.slane %v41_v7, 4 }
   0x9   :  { %v49_v13 = vrot.slane %v48_v8, 4  ;;  %v55_v14 = vsel %vm33_vm0, %v28_v3, 0.0  ;;  %v62_v16 = vsel %vm33_vm0, %v29_v4, 0.0  ;;  %v69_v17 = vsel %vm33_vm0, %v30_v5, 0.0  ;;  %s198_s0 = smov [#allocation5]   ;;  %s129_s16 = sshll.u32 %s228_s1, 4  ;;  %s130_s16 = int_to_ptr.hbm [resolvable:$true] %s129_s16 }
   0xa   :  { %v56_v15 = vrot.slane %v55_v14, 4  ;;  %v76_v18 = vsel %vm33_vm0, %v31_v9, 0.0  ;;  %v36_v19 = vadd.f32 %v35_v11, %v34_v6  ;;  %v43_v20 = vadd.f32 %v42_v12, %v41_v7  ;;  %s127_s13 = sshll.u32 %s198_s0, 4  ;;  %s128_s13 = int_to_ptr.vmem [resolvable:$true] %s127_s13 }
   0xb   :  { %v50_v21 = vadd.f32 %v49_v13, %v48_v8  ;;  %v63_v22 = vrot.slane %v62_v16, 4  ;;  %v70_v24 = vrot.slane %v69_v17, 4  ;;  %v77_v25 = vrot.slane %v76_v18, 4 }
   0xc   :  { %v57_v23 = vadd.f32 %v56_v15, %v55_v14  ;;  %v83_v26 = vsel %vm33_vm0, %v32_v10, 0.0  ;;  %v37_v27 = vrot.slane %v36_v19, 2  ;;  %v44_v28 = vrot.slane %v43_v20, 2 }
   0xd   :  { %v51_v29 = vrot.slane %v50_v21, 2  ;;  %v64_v30 = vadd.f32 %v63_v22, %v62_v16  ;;  %v71_v32 = vadd.f32 %v70_v24, %v69_v17  ;;  %v78_v33 = vadd.f32 %v77_v25, %v76_v18 }
   0xe   :  { %v58_v31 = vrot.slane %v57_v23, 2  ;;  %v84_v34 = vrot.slane %v83_v26, 4  ;;  %vm110_vm3 = vcmask 1043459   ;;  %v38_v35 = vadd.f32 %v37_v27, %v36_v19 }
   0xf   :  { %v45_v36 = vadd.f32 %v44_v28, %v43_v20  ;;  %v52_v37 = vadd.f32 %v51_v29, %v50_v21  ;;  %v65_v38 = vrot.slane %v64_v30, 2  ;;  %v72_v40 = vrot.slane %v71_v32, 2 }
  0x10   :  { %v59_v39 = vadd.f32 %v58_v31, %v57_v23  ;;  %v79_v41 = vrot.slane %v78_v33, 2  ;;  %v85_v42 = vadd.f32 %v84_v34, %v83_v26  ;;  %v39_v43 = vrot.slane %v38_v35, 1 }
  0x11   :  { %v46_v44 = vrot.slane %v45_v36, 1  ;;  %v53_v45 = vrot.slane %v52_v37, 1  ;;  %v66_v46 = vadd.f32 %v65_v38, %v64_v30  ;;  %v73_v48 = vadd.f32 %v72_v40, %v71_v32 }
  0x12   :  { %v60_v47 = vrot.slane %v59_v39, 1  ;;  %v80_v49 = vadd.f32 %v79_v41, %v78_v33  ;;  %v86_v50 = vrot.slane %v85_v42, 2  ;;  %v40_v51 = vadd.f32 %v39_v43, %v38_v35 }
  0x13   :  { %v47_v52 = vadd.f32 %v46_v44, %v45_v36  ;;  %v54_v53 = vadd.f32 %v53_v45, %v52_v37  ;;  %v67_v54 = vrot.slane %v66_v46, 1  ;;  %v74_v56 = vrot.slane %v73_v48, 1 }
  0x14   :  { %v61_v55 = vadd.f32 %v60_v47, %v59_v39  ;;  %v81_v57 = vrot.slane %v80_v49, 1  ;;  %v87_v58 = vadd.f32 %v86_v50, %v85_v42  ;;  %v90_v60 = vmul.f32 0.125, %v40_v51 }
  0x15   :  { %v68_v59 = vadd.f32 %v67_v54, %v66_v46  ;;  %v91_v61 = vmul.f32 0.125, %v47_v52  ;;  %v92_v62 = vmul.f32 0.125, %v54_v53  ;;  %v75_v63 = vadd.f32 %v74_v56, %v73_v48 }
  0x16   :  { %v82_v0 = vadd.f32 %v81_v57, %v80_v49  ;;  %v88_v1 = vrot.slane %v87_v58, 1  ;;  %v93_v2 = vmul.f32 0.125, %v61_v55  ;;  %vm112_vm4 = vcmask 1044484  }
  0x17   :  { %v94_v3 = vmul.f32 0.125, %v68_v59  ;;  %v107_v4 = vsel %vm106_vm1, %v91_v61, %v90_v60  ;;  %vm114_vm5 = vcmask 1045509   ;;  %v95_v6 = vmul.f32 0.125, %v75_v63 }
  0x18   :  { %v89_v5 = vadd.f32 %v88_v1, %v87_v58  ;;  %v96_v7 = vmul.f32 0.125, %v82_v0  ;;  %v109_v8 = vsel %vm108_vm2, %v92_v62, %v107_v4  ;;  %vm116_vm6 = vcmask 1046534  }
  0x19   :  { %v111_v9 = vsel %vm110_vm3, %v93_v2, %v109_v8  ;;  %vm118_vm7 = vcmask 1047559  }
  0x1a   :  { %v97_v10 = vmul.f32 0.125, %v89_v5  ;;  %v113_v11 = vsel %vm112_vm4, %v94_v3, %v111_v9 }
  0x1b   :  { %v115_v12 = vsel %vm114_vm5, %v95_v6, %v113_v11 }
  0x1c   :  { %v117_v13 = vsel %vm116_vm6, %v96_v7, %v115_v12 }
  0x1d   :  { %v119_v14 = vsel %vm118_vm7, %v97_v10, %v117_v13 }
  0x1e   :  { %121 = vst.msk [vmem:[#allocation5] sm:$0xff] %vm33_vm0, %v119_v14 }
  0x1f   :  { %132 = dma.vmem_to_hbm [thread:$0]  %s128_s13, 128, %s130_s16, [#allocation4]  }
  0x20   :  { %193 = dma.done.wait [#allocation4], 128  }
  0x21   :  { %194 = vsyncadd [#allocation4], 4294967168 }
  0x22   :  { %137 = vsyncpa [#allocation3], 1 }
  0x23   :  { %138 = vsyncpa [#allocation4], 1 }

</bundles_post_ra>
